<compile_context>
chip_gen: v5e
topology: v5e:2x2
jax: 0.10.0
libtpu: 0.0.40
codegen_flags: <defaults>
</compile_context>

<pallas_src>
import jax
import jax.numpy as jnp
from jax.experimental import pallas as pl
from jax.experimental.pallas import tpu as pltpu


def _make_kernel(D: int, produce_cat: bool, use_y: bool):
    """Kernel over one batch tile. Inputs are flattened (TB, N*D) slabs."""

    def kernel(*refs):
        refs = list(refs)
        x_ref = refs.pop(0)                       # (TB, 6*D)
        y_ref = refs.pop(0) if use_y else None    # (TB, 5*D)

        if produce_cat:
            cat_ref = refs.pop(0)
            cat_ref[...] = x_ref[...]             # whole-slab copy (TB, 6D)

        cat1_ref = refs.pop(0)
        cat1_ref[...] = x_ref[:, : 5 * D]         # contiguous prefix (TB, 5D)

        cat2_ref = refs.pop(0)                    # three 128-aligned lane slices
        cat2_ref[:, 0 * D : 1 * D] = x_ref[:, 0 * D : 1 * D]
        cat2_ref[:, 1 * D : 2 * D] = x_ref[:, 2 * D : 3 * D]
        cat2_ref[:, 2 * D : 3 * D] = x_ref[:, 4 * D : 5 * D]

        if use_y:
            cat3_ref = refs.pop(0)
            cat3_ref[...] = y_ref[...]            # whole-slab copy (TB, 5D)

    return kernel


def select_cat(x: jax.Array, y: jax.Array, *, block_b: int | None = None):
    B, Nx, D = x.shape
    By, Ny, Dy = y.shape
    assert Nx >= 6 and Ny >= 5 and B == By and D == Dy

    cat_is_view = Nx == 6    # cat  is bit-identical to x.reshape(B, 6D)
    cat3_is_view = Ny == 5   # cat3 is bit-identical to y.reshape(B, 5D)
    produce_cat = not cat_is_view
    use_y = not cat3_is_view

    # Free metadata reshapes: D stays on the lane axis, batch on sublanes.
    x2 = x.reshape(B, Nx * D)
    y2 = y.reshape(B, Ny * D)

    # --- batch-tile size: keep double-buffered working set ~<= 16 MiB -------
    itemsize = jnp.dtype(x.dtype).itemsize
    cols = 6 + 5 + 3                      # x input block + cat1 + cat2
    if produce_cat:
        cols += 6                         # cat output block
    if use_y:
        cols += 5 + 5                     # y input block + cat3 output block
    bytes_per_row = cols * D * itemsize

    if block_b is None:
        budget = 8 * 1024 * 1024          # per pipeline stage (x2 when buffered)
        block_b = max(8, min(1024, budget // bytes_per_row))

    if B <= block_b:
        TB = B                            # full extent: always layout-legal
    else:
        TB = max(8, (block_b // 8) * 8)   # sublane-aligned tile
    grid = (pl.cdiv(B, TB),)

    # --- specs ---------------------------------------------------------------
    row_block = lambda i: (i, 0)

    inputs = [x2]
    in_specs = [pl.BlockSpec((TB, 6 * D), row_block)]   # only the 6 used slices
    if use_y:
        inputs.append(y2)
        in_specs.append(pl.BlockSpec((TB, 5 * D), row_block))

    out_shapes, out_specs = [], []
    if produce_cat:
        out_shapes.append(jax.ShapeDtypeStruct((B, 6 * D), x.dtype))
        out_specs.append(pl.BlockSpec((TB, 6 * D), row_block))
    out_shapes.append(jax.ShapeDtypeStruct((B, 5 * D), x.dtype))
    out_specs.append(pl.BlockSpec((TB, 5 * D), row_block))
    out_shapes.append(jax.ShapeDtypeStruct((B, 3 * D), x.dtype))
    out_specs.append(pl.BlockSpec((TB, 3 * D), row_block))
    if use_y:
        out_shapes.append(jax.ShapeDtypeStruct((B, 5 * D), y.dtype))
        out_specs.append(pl.BlockSpec((TB, 5 * D), row_block))

    outs = pl.pallas_call(
        _make_kernel(D, produce_cat, use_y),
        out_shape=tuple(out_shapes),
        grid=grid,
        in_specs=in_specs,
        out_specs=tuple(out_specs),
        compiler_params=pltpu.CompilerParams(
            dimension_semantics=("parallel",),      # shard B-tiles across TCs
            vmem_limit_bytes=32 * 1024 * 1024,
        ),
    )(*inputs)

    outs = list(outs) if isinstance(outs, (tuple, list)) else [outs]
    cat = x2 if cat_is_view else outs.pop(0)
    cat1 = outs.pop(0)
    cat2 = outs.pop(0)
    cat3 = y2 if cat3_is_view else outs.pop(0)
    return cat, cat1, cat2, cat3


def _reference(x, y):
    cat = jnp.concatenate([x[:, i, :] for i in range(6)], axis=1)
    cat1 = jnp.concatenate([x[:, i, :] for i in range(5)], axis=1)
    cat2 = jnp.concatenate([x[:, i, :] for i in (0, 2, 4)], axis=1)
    cat3 = jnp.concatenate([y[:, i, :] for i in range(5)], axis=1)
    return cat, cat1, cat2, cat3


if __name__ == "__main__":
    key = jax.random.PRNGKey(0)
    k1, k2, k3, k4 = jax.random.split(key, 4)

    D = 128

    # Case 1: Nx == 6, Ny == 5 -> cat / cat3 are zero-copy reshapes; the
    # kernel only materializes cat1 and cat2.
    B = 8
    x = jax.random.normal(k1, (B, 6, D), dtype=jnp.float32)
    y = jax.random.normal(k2, (B, 5, D), dtype=jnp.float32)
    outs = jax.block_until_ready(select_cat(x, y))
    for o, r in zip(outs, _reference(x, y)):
        assert o.shape == r.shape and o.dtype == r.dtype
        assert jnp.array_equal(o, r), "mismatch vs reference (case 1)"

    # Case 2: Nx > 6, Ny > 5, multi-step grid with a ragged last batch tile.
    B2 = 20
    xb = jax.random.normal(k3, (B2, 8, D), dtype=jnp.float32)
    yb = jax.random.normal(k4, (B2, 7, D), dtype=jnp.float32)
    outs2 = jax.block_until_ready(select_cat(xb, yb, block_b=8))
    for o, r in zip(outs2, _reference(xb, yb)):
        assert o.shape == r.shape and o.dtype == r.dtype
        assert jnp.array_equal(o, r), "mismatch vs reference (case 2)"

    print("KERNEL_OK")
</pallas_src>

<mosaic_0001>
module attributes {stable_mosaic.version = 11 : i64} {
  func.func @kernel(%arg0: i32, %arg1: memref<8x768xf32, #tpu.memory_space<vmem>>, %arg2: memref<8x640xf32, #tpu.memory_space<vmem>>, %arg3: memref<8x384xf32, #tpu.memory_space<vmem>>) attributes {dimension_semantics = [#tpu.dimension_semantics<parallel>], iteration_bounds = array<i64: 1>, scalar_prefetch = 0 : i64, scratch_operands = 0 : i64, tpu.core_type = #tpu.core_type<tc>, window_params = [{transform_indices = @transform_0, window_bounds = array<i64: 8, 768>}, {transform_indices = @transform_1, window_bounds = array<i64: 8, 640>}, {transform_indices = @transform_2, window_bounds = array<i64: 8, 384>}]} {
    %c0 = arith.constant 0 : index
    %c0_0 = arith.constant 0 : index
    %0 = vector.load %arg1[%c0, %c0_0] : memref<8x768xf32, #tpu.memory_space<vmem>>, vector<8x640xf32>
    %c0_1 = arith.constant 0 : index
    %c0_2 = arith.constant 0 : index
    %1 = vector.load %arg2[%c0_1, %c0_2] : memref<8x640xf32, #tpu.memory_space<vmem>>, vector<8x640xf32>
    tpu.vector_store %arg2[%c0_1, %c0_2], %0 {strides = array<i32>} : memref<8x640xf32, #tpu.memory_space<vmem>>, vector<8x640xf32>,
    %c0_3 = arith.constant 0 : index
    %c0_4 = arith.constant 0 : index
    %2 = vector.load %arg1[%c0_3, %c0_4] : memref<8x768xf32, #tpu.memory_space<vmem>>, vector<8x128xf32>
    %c0_5 = arith.constant 0 : index
    %c0_6 = arith.constant 0 : index
    %3 = vector.load %arg3[%c0_5, %c0_6] : memref<8x384xf32, #tpu.memory_space<vmem>>, vector<8x128xf32>
    tpu.vector_store %arg3[%c0_5, %c0_6], %2 {strides = array<i32>} : memref<8x384xf32, #tpu.memory_space<vmem>>, vector<8x128xf32>,
    %c0_7 = arith.constant 0 : index
    %c256 = arith.constant 256 : index
    %4 = vector.load %arg1[%c0_7, %c256] : memref<8x768xf32, #tpu.memory_space<vmem>>, vector<8x128xf32>
    %c0_8 = arith.constant 0 : index
    %c128 = arith.constant 128 : index
    %5 = vector.load %arg3[%c0_8, %c128] : memref<8x384xf32, #tpu.memory_space<vmem>>, vector<8x128xf32>
    tpu.vector_store %arg3[%c0_8, %c128], %4 {strides = array<i32>} : memref<8x384xf32, #tpu.memory_space<vmem>>, vector<8x128xf32>,
    %c0_9 = arith.constant 0 : index
    %c512 = arith.constant 512 : index
    %6 = vector.load %arg1[%c0_9, %c512] : memref<8x768xf32, #tpu.memory_space<vmem>>, vector<8x128xf32>
    %c0_10 = arith.constant 0 : index
    %c256_11 = arith.constant 256 : index
    %7 = vector.load %arg3[%c0_10, %c256_11] : memref<8x384xf32, #tpu.memory_space<vmem>>, vector<8x128xf32>
    tpu.vector_store %arg3[%c0_10, %c256_11], %6 {strides = array<i32>} : memref<8x384xf32, #tpu.memory_space<vmem>>, vector<8x128xf32>,
    return
  }
  func.func @transform_0(%arg0: i32) -> (i32, i32) {
    %c0_i32 = arith.constant 0 : i32
    %c0_i32_0 = arith.constant 0 : i32
    return %arg0, %c0_i32 : i32, i32
  }
  func.func @transform_1(%arg0: i32) -> (i32, i32) {
    %c0_i32 = arith.constant 0 : i32
    %c0_i32_0 = arith.constant 0 : i32
    return %arg0, %c0_i32 : i32, i32
  }
  func.func @transform_2(%arg0: i32) -> (i32, i32) {
    %c0_i32 = arith.constant 0 : i32
    %c0_i32_0 = arith.constant 0 : i32
    return %arg0, %c0_i32 : i32, i32
  }
}

</mosaic_0001>

<bundles_post_ra>
// kernel: tpu_custom_call.1
= control target key start
LH: loop header
LB: loop body
LE: loop exit
PB: predicated region body
PF: predicated region fallthrough
CT: control target
= control target key end

     0   :  { %8 = vsyncpa [#allocation3], 0  ;;  %s183_s0 = inlined_call_operand.hbm [shape: f32[8,768], index: 0, kind: input, shape index: {}]   ;;  %s184_s1 = inlined_call_operand.hbm [shape: f32[8,640], index: 1, kind: output, shape index: {0}]   ;;  %s185_s2 = inlined_call_operand.hbm [shape: f32[8,384], index: 2, kind: output, shape index: {1}]  }
   0x1   :  { %9 = vsyncpa [#allocation4], 0 }
   0x2   :  { %10 = vsyncpa [#allocation7], 0  ;;  %s16_s11 = sshll.u32 %s183_s0, 4  ;;  %s156_s12 = smov [#allocation2]   ;;  %s17_s11 = int_to_ptr.hbm [resolvable:$true] %s16_s11 }
   0x3   :  { %s18_s13 = sshll.u32 %s156_s12, 4  ;;  %s19_s13 = int_to_ptr.vmem [resolvable:$true] %s18_s13 }
   0x4   :  { %21 = dma.hbm_to_vmem [thread:$0]  %s17_s11, 768, %s19_s13, [#allocation3]  }
   0x5   :  { %150 = dma.done.wait [#allocation3], 768  }
   0x6   :  { %151 = vsyncadd [#allocation3], 4294966528  ;;  %v26_v0 = vld [vmem:[#allocation2] sm:$0xff]  ;;  %v27_v1 = vld [vmem:[#allocation2 + $0x8] sm:$0xff]  ;;  %s157_s14 = smov [#allocation5]   ;;  %s49_s18 = sshll.u32 %s184_s1, 4  ;;  %s50_s18 = int_to_ptr.hbm [resolvable:$true] %s49_s18 }
   0x7   :  { %v28_v2 = vld [vmem:[#allocation2 + $0x10] sm:$0xff]  ;;  %s47_s15 = sshll.u32 %s157_s14, 4  ;;  %31 = vst [vmem:[#allocation5] sm:$0xff] %v26_v0  ;;  %v29_v3 = vld [vmem:[#allocation2 + $0x18] sm:$0xff]  ;;  %v30_v4 = vld [vmem:[#allocation2 + $0x20] sm:$0xff]  ;;  %s158_s0 = smov [#allocation6]   ;;  %s48_s15 = int_to_ptr.vmem [resolvable:$true] %s47_s15 }
   0x8   :  { %32 = vst [vmem:[#allocation5 + $0x8] sm:$0xff] %v27_v1  ;;  %s58_s19 = sshll.u32 %s158_s0, 4  ;;  %s60_s22 = sshll.u32 %s185_s2, 4  ;;  %s59_s19 = int_to_ptr.vmem [resolvable:$true] %s58_s19  ;;  %s61_s22 = int_to_ptr.hbm [resolvable:$true] %s60_s22 }
   0x9   :  { %33 = vst [vmem:[#allocation5 + $0x10] sm:$0xff] %v28_v2 }
   0xa   :  { %34 = vst [vmem:[#allocation5 + $0x18] sm:$0xff] %v29_v3 }
   0xb   :  { %35 = vst [vmem:[#allocation5 + $0x20] sm:$0xff] %v30_v4 }
   0xc   :  { %37 = vst [vmem:[#allocation6] sm:$0xff] %v26_v0  ;;  %52 = dma.vmem_to_hbm [thread:$0]  %s48_s15, 640, %s50_s18, [#allocation4]  }
   0xd   :  { %39 = vst [vmem:[#allocation6 + $0x8] sm:$0xff] %v28_v2 }
   0xe   :  { %41 = vst [vmem:[#allocation6 + $0x10] sm:$0xff] %v30_v4 }
   0xf   :  { %63 = dma.vmem_to_hbm [thread:$0]  %s59_s19, 384, %s61_s22, [#allocation7]  }
  0x10   :  { %152 = dma.done.wait [#allocation4], 640  }
  0x11   :  { %153 = vsyncadd [#allocation4], 4294966656 }
  0x12   :  { %154 = dma.done.wait [#allocation7], 384  }
  0x13   :  { %155 = vsyncadd [#allocation7], 4294966912 }
  0x14   :  { %72 = vsyncpa [#allocation3], 1 }
  0x15   :  { %73 = vsyncpa [#allocation4], 1 }
  0x16   :  { %74 = vsyncpa [#allocation7], 1 }

</bundles_post_ra>
